<compile_context>
chip_gen: v6e
topology: v6e:2x2x1
jax: 0.10.0
libtpu: 0.0.40
codegen_flags: <defaults>
</compile_context>

<pallas_src>
import jax
import jax.numpy as jnp
from jax.experimental import pallas as pl
from jax.experimental.pallas import tpu as pltpu

LANE = 128           # TPU lane width
BF16_SUBLANE = 16    # bf16 packed sublane tile height


def _round_up(n, m):
    return ((n + m - 1) // m) * m


def _cdiv(a, b):
    return (a + b - 1) // b


def dqn_kernel(x_ref, w1_ref, b1_ref, w2_ref, b2_ref,
               w3_ref, b3_ref, w4_ref, b4_ref, o_ref):
    # x tile: (TB, input_size) f32, cast to bf16 in-kernel (no HBM pre-pass).
    # Weights: bf16 [in, out] (fc4 cols padded to 128). Biases: f32 (1, out).
    # Every matmul accumulates in f32 on the MXU; hidden activations are
    # re-cast to bf16 before the next matmul.
    h = x_ref[...].astype(jnp.bfloat16)

    h = jnp.dot(h, w1_ref[...], preferred_element_type=jnp.float32) + b1_ref[...]
    h = jnp.maximum(h, 0.0).astype(jnp.bfloat16)

    h = jnp.dot(h, w2_ref[...], preferred_element_type=jnp.float32) + b2_ref[...]
    h = jnp.maximum(h, 0.0).astype(jnp.bfloat16)

    h = jnp.dot(h, w3_ref[...], preferred_element_type=jnp.float32) + b3_ref[...]
    h = jnp.maximum(h, 0.0).astype(jnp.bfloat16)

    out = jnp.dot(h, w4_ref[...], preferred_element_type=jnp.float32) + b4_ref[...]
    o_ref[...] = out.astype(o_ref.dtype)   # lane-dense (TB, 128) bf16 store


def init_dqn_params(key, input_size, output_size):
    """Logical (PyTorch-equivalent) f32 params; W stored as [in, out]."""
    dims = [(input_size, 256), (256, 256), (256, 128), (128, output_size)]
    names = ["fc1", "fc2", "fc3", "fc4"]
    params = {}
    for name, (fan_in, fan_out) in zip(names, dims):
        key, kw, kb = jax.random.split(key, 3)
        bound = 1.0 / (fan_in ** 0.5)
        W = jax.random.uniform(kw, (fan_in, fan_out), jnp.float32, -bound, bound)
        b = jax.random.uniform(kb, (1, fan_out), jnp.float32, -bound, bound)
        params[name] = (W, b)
    return params


def pack_dqn_params(params, input_size, output_size):
    """Pad only the final layer's columns to a lane-dense 128 width and cast
    weights to bf16. Done ONCE, not per forward call. The input dim stays at
    its native size (the MXU handles the small contracting dim)."""
    pad_out = _round_up(output_size, LANE)
    packed = {"meta": dict(input_size=input_size, output_size=output_size,
                           pad_out=pad_out)}
    for name in ["fc1", "fc2", "fc3", "fc4"]:
        W, b = params[name]
        cpad = (pad_out - output_size) if name == "fc4" else 0
        Wp = jnp.pad(W, ((0, 0), (0, cpad))).astype(jnp.bfloat16)
        bp = jnp.pad(b, ((0, 0), (0, cpad)))        # bias stays f32
        packed[name] = (Wp, bp)
    return packed


def _choose_tiling(B, tb_cap, multi_tile_min_b):
    """Batch tile selection.
      * B <= multi_tile_min_b : one tile == whole batch (block dim equals the
        full array dim -> always a legal block, zero padding, one grid step).
      * larger B              : >= 2 tiles (both v7x TCs get work), each tile
        capped at tb_cap rows (VMEM-safe on 64 MiB v7x)."""
    if B <= multi_tile_min_b:
        return B, 1
    tiles = max(2, _cdiv(B, tb_cap))
    tb = _round_up(_cdiv(B, tiles), BF16_SUBLANE)
    return tb, _cdiv(B, tb)


def dqn_forward(x, packed, *, tb_cap=2048, multi_tile_min_b=1024):
    """x: [B, input_size] f32.  packed: output of pack_dqn_params."""
    meta = packed["meta"]
    in_size, out_size = meta["input_size"], meta["output_size"]
    pad_out = meta["pad_out"]
    (w1, b1), (w2, b2), (w3, b3), (w4, b4) = (
        packed["fc1"], packed["fc2"], packed["fc3"], packed["fc4"])

    B = x.shape[0]
    assert x.shape[1] == in_size
    tb, num_tiles = _choose_tiling(B, tb_cap, multi_tile_min_b)
    b_pad = tb * num_tiles

    # Only a cheap batch-row pad of the narrow (B, in_size) f32 input when the
    # batch is ragged w.r.t. the tile; no column pad, no dtype-cast pre-pass.
    x_in = x if b_pad == B else jnp.pad(x, ((0, b_pad - B), (0, 0)))

    weights = (w1, b1, w2, b2, w3, b3, w4, b4)
    flops = 2 * b_pad * sum(w.shape[0] * w.shape[1] for w in (w1, w2, w3, w4))
    bytes_accessed = (x_in.size * x_in.dtype.itemsize
                      + sum(a.size * a.dtype.itemsize for a in weights)
                      + b_pad * pad_out * 2)          # bf16 output writeback

    def resident(arr):
        # Whole-array block with constant block index -> stays VMEM-resident
        # across all batch tiles; single buffer since it is never re-fetched.
        return pl.BlockSpec(arr.shape, lambda i: (0,) * arr.ndim,
                            pipeline_mode=pl.Buffered(1))

    out = pl.pallas_call(
        dqn_kernel,
        out_shape=jax.ShapeDtypeStruct((b_pad, pad_out), jnp.bfloat16),
        grid_spec=pltpu.PrefetchScalarGridSpec(
            num_scalar_prefetch=0,
            grid=(num_tiles,),
            in_specs=[
                pl.BlockSpec((tb, in_size), lambda i: (i, 0)),  # x: native shape, batch-tiled
                resident(w1), resident(b1),
                resident(w2), resident(b2),
                resident(w3), resident(b3),
                resident(w4), resident(b4),
            ],
            out_specs=pl.BlockSpec((tb, pad_out), lambda i: (i, 0)),
        ),
        compiler_params=pltpu.CompilerParams(
            dimension_semantics=("parallel",),        # batch tiles shard across v7x TCs
            vmem_limit_bytes=32 * 1024 * 1024),       # generation-safe (v7x: 64 MiB phys)
        cost_estimate=pl.CostEstimate(
            flops=flops, transcendentals=0, bytes_accessed=bytes_accessed),
    )(x_in, w1, b1, w2, b2, w3, b3, w4, b4)

    # Tiny post-ops on [B, out_size]: slice the logical Q-values, return f32.
    return out[:B, :out_size].astype(jnp.float32)


def dqn_reference_f32(x, params):
    h = x
    for name in ["fc1", "fc2", "fc3"]:
        W, b = params[name]
        h = jnp.maximum(h @ W + b, 0.0)
    W, b = params["fc4"]
    return h @ W + b


def dqn_reference_bf16(x, params):
    # Mirrors the kernel numerics: bf16 matmul inputs, f32 accumulation,
    # bf16 output store.
    h = x.astype(jnp.bfloat16)
    for name in ["fc1", "fc2", "fc3", "fc4"]:
        W, b = params[name]
        h = jnp.dot(h, W.astype(jnp.bfloat16),
                    preferred_element_type=jnp.float32) + b
        if name != "fc4":
            h = jnp.maximum(h, 0.0).astype(jnp.bfloat16)
    return h.astype(jnp.bfloat16).astype(jnp.float32)


if __name__ == "__main__":
    key = jax.random.PRNGKey(0)
    key, kx, kp = jax.random.split(key, 3)

    input_size = 16    # small state vector
    output_size = 4    # number of actions

    params = init_dqn_params(kp, input_size, output_size)
    packed = pack_dqn_params(params, input_size, output_size)

    # Case 1: tiny batch (single whole-batch tile), as in per-step RL acting.
    x_small = jax.random.normal(kx, (2, input_size), dtype=jnp.float32)
    out_small = jax.block_until_ready(dqn_forward(x_small, packed))

    # Case 2: forces the multi-tile path (2 tiles of 16 rows, ragged batch
    # padded 20 -> 32) to exercise the grid + "parallel" batch axis.
    key, kx2 = jax.random.split(key)
    x_big = jax.random.normal(kx2, (20, input_size), dtype=jnp.float32)
    out_big = jax.block_until_ready(
        dqn_forward(x_big, packed, tb_cap=16, multi_tile_min_b=16))

    for x, out in ((x_small, out_small), (x_big, out_big)):
        assert out.shape == (x.shape[0], output_size)
        ref_bf16 = dqn_reference_bf16(x, params)
        assert jnp.allclose(out, ref_bf16, atol=1e-2, rtol=2e-2), \
            "mismatch vs bf16-matched reference"
        ref_f32 = dqn_reference_f32(x, params)
        assert jnp.allclose(out, ref_f32, atol=5e-2, rtol=5e-2), \
            "mismatch vs f32 reference"

    print("KERNEL_OK")
</pallas_src>

<mosaic_0001>
module attributes {stable_mosaic.version = 11 : i64} {
  func.func @dqn_kernel(%arg0: i32, %arg1: memref<2x16xf32, #tpu.memory_space<vmem>>, %arg2: memref<16x256xbf16, #tpu.memory_space<vmem>>, %arg3: memref<1x256xf32, #tpu.memory_space<vmem>>, %arg4: memref<256x256xbf16, #tpu.memory_space<vmem>>, %arg5: memref<1x256xf32, #tpu.memory_space<vmem>>, %arg6: memref<256x128xbf16, #tpu.memory_space<vmem>>, %arg7: memref<1x128xf32, #tpu.memory_space<vmem>>, %arg8: memref<128x128xbf16, #tpu.memory_space<vmem>>, %arg9: memref<1x128xf32, #tpu.memory_space<vmem>>, %arg10: memref<2x128xbf16, #tpu.memory_space<vmem>>) attributes {dimension_semantics = [#tpu.dimension_semantics<parallel>], iteration_bounds = array<i64: 1>, scalar_prefetch = 0 : i64, scratch_operands = 0 : i64, tpu.core_type = #tpu.core_type<tc>, window_params = [{transform_indices = @transform_0, window_bounds = array<i64: 2, 16>}, {pipeline_mode = #tpu.pipeline_mode<synchronous>, transform_indices = @transform_1, window_bounds = array<i64: 16, 256>}, {pipeline_mode = #tpu.pipeline_mode<synchronous>, transform_indices = @transform_2, window_bounds = array<i64: 1, 256>}, {pipeline_mode = #tpu.pipeline_mode<synchronous>, transform_indices = @transform_3, window_bounds = array<i64: 256, 256>}, {pipeline_mode = #tpu.pipeline_mode<synchronous>, transform_indices = @transform_4, window_bounds = array<i64: 1, 256>}, {pipeline_mode = #tpu.pipeline_mode<synchronous>, transform_indices = @transform_5, window_bounds = array<i64: 256, 128>}, {pipeline_mode = #tpu.pipeline_mode<synchronous>, transform_indices = @transform_6, window_bounds = array<i64: 1, 128>}, {pipeline_mode = #tpu.pipeline_mode<synchronous>, transform_indices = @transform_7, window_bounds = array<i64: 128, 128>}, {pipeline_mode = #tpu.pipeline_mode<synchronous>, transform_indices = @transform_8, window_bounds = array<i64: 1, 128>}, {transform_indices = @transform_9, window_bounds = array<i64: 2, 128>}]} {
    %c0 = arith.constant 0 : index
    %c0_0 = arith.constant 0 : index
    %0 = vector.load %arg1[%c0, %c0_0] : memref<2x16xf32, #tpu.memory_space<vmem>>, vector<2x16xf32>
    %1 = arith.truncf %0 : vector<2x16xf32> to vector<2x16xbf16>
    %c0_1 = arith.constant 0 : index
    %c0_2 = arith.constant 0 : index
    %2 = vector.load %arg2[%c0_1, %c0_2] : memref<16x256xbf16, #tpu.memory_space<vmem>>, vector<16x256xbf16>
    %cst = arith.constant dense<0.000000e+00> : vector<2x256xf32>
    %3 = tpu.matmul %1, %2, %cst {dimension_numbers = #tpu.dot_dimension_numbers<[1], [0], [0], [1], [0, 0, 1, 1], [], []>} : vector<2x16xbf16>, vector<16x256xbf16>, vector<2x256xf32> -> vector<2x256xf32>
    %c0_3 = arith.constant 0 : index
    %c0_4 = arith.constant 0 : index
    %4 = vector.load %arg3[%c0_3, %c0_4] : memref<1x256xf32, #tpu.memory_space<vmem>>, vector<1x256xf32>
    %5 = vector.broadcast %4 : vector<1x256xf32> to vector<2x256xf32>
    %6 = arith.addf %3, %5 : vector<2x256xf32>
    %cst_5 = arith.constant 0.000000e+00 : f32
    %7 = vector.broadcast %cst_5 : f32 to vector<2x256xf32>
    %8 = arith.maximumf %6, %7 : vector<2x256xf32>
    %9 = arith.truncf %8 : vector<2x256xf32> to vector<2x256xbf16>
    %c0_6 = arith.constant 0 : index
    %c0_7 = arith.constant 0 : index
    %10 = vector.load %arg4[%c0_6, %c0_7] : memref<256x256xbf16, #tpu.memory_space<vmem>>, vector<256x256xbf16>
    %cst_8 = arith.constant dense<0.000000e+00> : vector<2x256xf32>
    %11 = tpu.matmul %9, %10, %cst_8 {dimension_numbers = #tpu.dot_dimension_numbers<[1], [0], [0], [1], [0, 0, 1, 1], [], []>} : vector<2x256xbf16>, vector<256x256xbf16>, vector<2x256xf32> -> vector<2x256xf32>
    %c0_9 = arith.constant 0 : index
    %c0_10 = arith.constant 0 : index
    %12 = vector.load %arg5[%c0_9, %c0_10] : memref<1x256xf32, #tpu.memory_space<vmem>>, vector<1x256xf32>
    %13 = vector.broadcast %12 : vector<1x256xf32> to vector<2x256xf32>
    %14 = arith.addf %11, %13 : vector<2x256xf32>
    %cst_11 = arith.constant 0.000000e+00 : f32
    %15 = vector.broadcast %cst_11 : f32 to vector<2x256xf32>
    %16 = arith.maximumf %14, %15 : vector<2x256xf32>
    %17 = arith.truncf %16 : vector<2x256xf32> to vector<2x256xbf16>
    %c0_12 = arith.constant 0 : index
    %c0_13 = arith.constant 0 : index
    %18 = vector.load %arg6[%c0_12, %c0_13] : memref<256x128xbf16, #tpu.memory_space<vmem>>, vector<256x128xbf16>
    %cst_14 = arith.constant dense<0.000000e+00> : vector<2x128xf32>
    %19 = tpu.matmul %17, %18, %cst_14 {dimension_numbers = #tpu.dot_dimension_numbers<[1], [0], [0], [1], [0, 0, 1, 1], [], []>} : vector<2x256xbf16>, vector<256x128xbf16>, vector<2x128xf32> -> vector<2x128xf32>
    %c0_15 = arith.constant 0 : index
    %c0_16 = arith.constant 0 : index
    %20 = vector.load %arg7[%c0_15, %c0_16] : memref<1x128xf32, #tpu.memory_space<vmem>>, vector<1x128xf32>
    %21 = vector.broadcast %20 : vector<1x128xf32> to vector<2x128xf32>
    %22 = arith.addf %19, %21 : vector<2x128xf32>
    %cst_17 = arith.constant 0.000000e+00 : f32
    %23 = vector.broadcast %cst_17 : f32 to vector<2x128xf32>
    %24 = arith.maximumf %22, %23 : vector<2x128xf32>
    %25 = arith.truncf %24 : vector<2x128xf32> to vector<2x128xbf16>
    %c0_18 = arith.constant 0 : index
    %c0_19 = arith.constant 0 : index
    %26 = vector.load %arg8[%c0_18, %c0_19] : memref<128x128xbf16, #tpu.memory_space<vmem>>, vector<128x128xbf16>
    %cst_20 = arith.constant dense<0.000000e+00> : vector<2x128xf32>
    %27 = tpu.matmul %25, %26, %cst_20 {dimension_numbers = #tpu.dot_dimension_numbers<[1], [0], [0], [1], [0, 0, 1, 1], [], []>} : vector<2x128xbf16>, vector<128x128xbf16>, vector<2x128xf32> -> vector<2x128xf32>
    %c0_21 = arith.constant 0 : index
    %c0_22 = arith.constant 0 : index
    %28 = vector.load %arg9[%c0_21, %c0_22] : memref<1x128xf32, #tpu.memory_space<vmem>>, vector<1x128xf32>
    %29 = vector.broadcast %28 : vector<1x128xf32> to vector<2x128xf32>
    %30 = arith.addf %27, %29 : vector<2x128xf32>
    %31 = arith.truncf %30 : vector<2x128xf32> to vector<2x128xbf16>
    %c0_23 = arith.constant 0 : index
    %c0_24 = arith.constant 0 : index
    %32 = vector.load %arg10[%c0_23, %c0_24] : memref<2x128xbf16, #tpu.memory_space<vmem>>, vector<2x128xbf16>
    tpu.vector_store %arg10[%c0_23, %c0_24], %31 {strides = array<i32>} : memref<2x128xbf16, #tpu.memory_space<vmem>>, vector<2x128xbf16>,
    return
  }
  func.func @transform_0(%arg0: i32) -> (i32, i32) {
    %c0_i32 = arith.constant 0 : i32
    %c0_i32_0 = arith.constant 0 : i32
    return %arg0, %c0_i32 : i32, i32
  }
  func.func @transform_1(%arg0: i32) -> (i32, i32) {
    %c0_i32 = arith.constant 0 : i32
    %c0_i32_0 = arith.constant 0 : i32
    %c0_i32_1 = arith.constant 0 : i32
    return %c0_i32, %c0_i32_0 : i32, i32
  }
  func.func @transform_2(%arg0: i32) -> (i32, i32) {
    %c0_i32 = arith.constant 0 : i32
    %c0_i32_0 = arith.constant 0 : i32
    %c0_i32_1 = arith.constant 0 : i32
    return %c0_i32, %c0_i32_0 : i32, i32
  }
  func.func @transform_3(%arg0: i32) -> (i32, i32) {
    %c0_i32 = arith.constant 0 : i32
    %c0_i32_0 = arith.constant 0 : i32
    %c0_i32_1 = arith.constant 0 : i32
    return %c0_i32, %c0_i32_0 : i32, i32
  }
  func.func @transform_4(%arg0: i32) -> (i32, i32) {
    %c0_i32 = arith.constant 0 : i32
    %c0_i32_0 = arith.constant 0 : i32
    %c0_i32_1 = arith.constant 0 : i32
    return %c0_i32, %c0_i32_0 : i32, i32
  }
  func.func @transform_5(%arg0: i32) -> (i32, i32) {
    %c0_i32 = arith.constant 0 : i32
    %c0_i32_0 = arith.constant 0 : i32
    %c0_i32_1 = arith.constant 0 : i32
    return %c0_i32, %c0_i32_0 : i32, i32
  }
  func.func @transform_6(%arg0: i32) -> (i32, i32) {
    %c0_i32 = arith.constant 0 : i32
    %c0_i32_0 = arith.constant 0 : i32
    %c0_i32_1 = arith.constant 0 : i32
    return %c0_i32, %c0_i32_0 : i32, i32
  }
  func.func @transform_7(%arg0: i32) -> (i32, i32) {
    %c0_i32 = arith.constant 0 : i32
    %c0_i32_0 = arith.constant 0 : i32
    %c0_i32_1 = arith.constant 0 : i32
    return %c0_i32, %c0_i32_0 : i32, i32
  }
  func.func @transform_8(%arg0: i32) -> (i32, i32) {
    %c0_i32 = arith.constant 0 : i32
    %c0_i32_0 = arith.constant 0 : i32
    %c0_i32_1 = arith.constant 0 : i32
    return %c0_i32, %c0_i32_0 : i32, i32
  }
  func.func @transform_9(%arg0: i32) -> (i32, i32) {
    %c0_i32 = arith.constant 0 : i32
    %c0_i32_0 = arith.constant 0 : i32
    return %arg0, %c0_i32 : i32, i32
  }
}

</mosaic_0001>

<bundles_post_ra>
// kernel: tpu_custom_call.1
= control target key start
LH: loop header
LB: loop body
LE: loop exit
PB: predicated region body
PF: predicated region fallthrough
CT: control target
= control target key end

     0   :  { %14 = vsyncpa [#allocation3], 0  ;;  %s1164_s0 = inlined_call_operand.hbm [shape: f32[2,16], index: 0, kind: input, shape index: {}]   ;;  %s1165_s1 = inlined_call_operand.hbm [shape: bf16[16,256], index: 1, kind: input, shape index: {}]   ;;  %s1166_s2 = inlined_call_operand.vmem [shape: f32[1,256], index: 2, kind: input, shape index: {}]   ;;  %s1167_s3 = inlined_call_operand.hbm [shape: bf16[256,256], index: 3, kind: input, shape index: {}]   ;;  %s1168_s4 = inlined_call_operand.vmem [shape: f32[1,256], index: 4, kind: input, shape index: {}]   ;;  %s1169_s5 = inlined_call_operand.hbm [shape: bf16[256,128], index: 5, kind: input, shape index: {}]   ;;  %s1170_s6 = inlined_call_operand.vmem [shape: f32[1,128], index: 6, kind: input, shape index: {}]   ;;  %s1171_s7 = inlined_call_operand.hbm [shape: bf16[128,128], index: 7, kind: input, shape index: {}]   ;;  %s1172_s8 = inlined_call_operand.vmem [shape: f32[1,128], index: 8, kind: input, shape index: {}]   ;;  %s1173_s9 = inlined_call_operand.hbm [shape: bf16[2,128], index: 9, kind: output, shape index: {}]  }
   0x1   :  { %15 = vsyncpa [#allocation6], 0 }
   0x2   :  { %16 = vsyncpa [#allocation9], 0 }
   0x3   :  { %17 = vsyncpa [#allocation4], 0  ;;  %s1059_s30 = smov [#allocation5]  }
   0x4   :  { %s33_s10 = sshll.u32 %s1059_s30, 4  ;;  %s34_s10 = int_to_ptr.vmem [resolvable:$true] %s33_s10 }
   0x5   :  { %s939_s11 = scalar_lea.vmem %s34_s10, 256  ;;  %p944_p1 = scmp.lt.s32.totalorder %s34_s10, %s34_s10 }
   0x6   :  { %p940_p0 = scmp.ne.s32.totalorder %s34_s10, %s939_s11  ;;  %p945_p2 = scmp.lt.s32.totalorder %s939_s11, %s939_s11 }
   0x8   :  { %p946_p3 = por %p945_p2, %p944_p1 }
   0xa   :  { %p947_p4 = pnand %p946_p3, %p940_p0 }
   0xc   :  { %950 = shalt.err (!%p947_p4)
}
   0xd   :  { %s1060_s12 = smov 128   ;;  %s1061_s13 = smov 8  }
   0xe   :  { %39 = dma.hbm_to_vmem [thread:$0]  %s1165_s1, 256, %s34_s10, [#allocation6], %s1060_s12, %s1060_s12, %s1061_s13  }
   0xf   :  { %s1062_s16 = smov [#allocation8]  }
  0x10   :  { %s61_s17 = sshll.u32 %s1062_s16, 4  ;;  %s62_s17 = int_to_ptr.vmem [resolvable:$true] %s61_s17 }
  0x11   :  { %s959_s18 = scalar_lea.vmem %s62_s17, 2048  ;;  %p964_p6 = scmp.lt.s32.totalorder %s62_s17, %s62_s17 }
  0x12   :  { %p960_p5 = scmp.ne.s32.totalorder %s62_s17, %s959_s18  ;;  %p965_p7 = scmp.lt.s32.totalorder %s959_s18, %s959_s18 }
  0x14   :  { %p966_p8 = por %p965_p7, %p964_p6 }
  0x16   :  { %p967_p9 = pnand %p966_p8, %p960_p5 }
  0x18   :  { %970 = shalt.err (!%p967_p9)
}
  0x19   :  { %s1063_s19 = smov 64   ;;  %s1064_s20 = smov 4  }
  0x1a   :  { %67 = dma.hbm_to_vmem [thread:$0]  %s1169_s5, 2048, %s62_s17, [#allocation9], %s1063_s19, %s1063_s19, %s1064_s20  }
  0x1b   :  { %s1065_s1 = smov [#allocation2]   ;;  %s1066_s24 = smov [#allocation7]  }
  0x1c   :  { %s24_s23 = sshll.u32 %s1065_s1, 4  ;;  %s47_s25 = sshll.u32 %s1066_s24, 4  ;;  %s25_s23 = int_to_ptr.vmem [resolvable:$true] %s24_s23  ;;  %s48_s25 = int_to_ptr.vmem [resolvable:$true] %s47_s25 }
  0x1d   :  { %s979_s26 = scalar_lea.vmem %s25_s23, 32  ;;  %p984_p11 = scmp.lt.s32.totalorder %s25_s23, %s25_s23 }
  0x1e   :  { %p980_p10 = scmp.ne.s32.totalorder %s25_s23, %s979_s26  ;;  %p985_p12 = scmp.lt.s32.totalorder %s979_s26, %s979_s26 }
  0x20   :  { %p986_p13 = por %p985_p12, %p984_p11 }
  0x22   :  { %p987_p0 = pnand %p986_p13, %p980_p10 }
  0x24   :  { %990 = shalt.err (!%p987_p0)
}
  0x25   :  { %27 = dma.hbm_to_vmem [thread:$0]  %s1164_s0, 32, %s25_s23, [#allocation3]  }
  0x26   :  { %s999_s29 = scalar_lea.vmem %s48_s25, 4096  ;;  %p1004_p2 = scmp.lt.s32.totalorder %s48_s25, %s48_s25 }
  0x27   :  { %p1000_p1 = scmp.ne.s32.totalorder %s48_s25, %s999_s29  ;;  %p1005_p3 = scmp.lt.s32.totalorder %s999_s29, %s999_s29 }
  0x29   :  { %p1006_p4 = por %p1005_p3, %p1004_p2 }
  0x2b   :  { %p1007_p5 = pnand %p1006_p4, %p1000_p1 }
  0x2d   :  { %1010 = shalt.err (!%p1007_p5)
}
  0x2e   :  { %53 = dma.hbm_to_vmem [thread:$0]  %s1167_s3, 4096, %s48_s25, [#allocation6], %s1060_s12, %s1060_s12, %s1061_s13  }
  0x2f   :  { %s1067_s10 = smov [#allocation10]  }
  0x30   :  { %s75_s11 = sshll.u32 %s1067_s10, 4  ;;  %s76_s11 = int_to_ptr.vmem [resolvable:$true] %s75_s11 }
  0x31   :  { %s1019_s14 = scalar_lea.vmem %s76_s11, 1024  ;;  %p1024_p7 = scmp.lt.s32.totalorder %s76_s11, %s76_s11 }
  0x32   :  { %p1020_p6 = scmp.ne.s32.totalorder %s76_s11, %s1019_s14  ;;  %p1025_p8 = scmp.lt.s32.totalorder %s1019_s14, %s1019_s14 }
  0x34   :  { %p1026_p9 = por %p1025_p8, %p1024_p7 }
  0x36   :  { %p1027_p10 = pnand %p1026_p9, %p1020_p6 }
  0x38   :  { %1030 = shalt.err (!%p1027_p10)
}
  0x39   :  { %81 = dma.hbm_to_vmem [thread:$0]  %s1171_s7, 1024, %s76_s11, [#allocation9], %s1063_s19, %s1063_s19, %s1064_s20  }
  0x3a   :  { %1051 = dma.done.wait [#allocation3], 32  }
  0x3b   :  { %1052 = vsyncadd [#allocation3], 4294967264 }
  0x3c   :  { %1053 = dma.done.wait [#allocation6], 4352  }
  0x3d   :  { %1054 = vsyncadd [#allocation6], 4294962944 }
  0x3e   :  { %1055 = dma.done.wait [#allocation9], 3072  }
  0x3f   :  { %1056 = vsyncadd [#allocation9], 4294964224  ;;  %v1068_v0 = vmov 0   ;;  %v856_v1 = vld [vmem:[#allocation5 + $0x4] ss:$8 sps:$4 sm:$0xff]   ;;  %vm126_vm0 = vcmask 130048   ;;  %v106_v49 = vlaneseq }
  0x40   :  { %162 = vmatprep.mubr.bf16.mxu0 %v1068_v0  ;;  %v858_v2 = vld [vmem:[#allocation5] ss:$8 sps:$4 sm:$0xff]   ;;  %v100_v3 = vld [vmem:[#allocation2] sm:$0x3]  ;;  %144 = vmatprep.subr.bf16.mxu0 %v856_v1  ;;  %v859_v5 = vld [vmem:[#allocation7 + $0x74] ss:$8 sps:$4 sm:$0xff]  }
  0x41   :  { %v101_v4 = vpack.c.bf16 %v100_v3, %v100_v3  ;;  %v861_v6 = vld [vmem:[#allocation7 + $0x70] ss:$8 sps:$4 sm:$0xff]   ;;  %145 = vmatpush1.bf16.msra.mxu0 %v858_v2  ;;  %v862_v7 = vld [vmem:[#allocation7 + $0x64] ss:$8 sps:$4 sm:$0xff]   ;;  %379 = vmatprep.subr.bf16.mxu1 %v859_v5  ;;  %v864_v8 = vld [vmem:[#allocation7 + $0x60] ss:$8 sps:$4 sm:$0xff]  }
  0x42   :  { %380 = vmatpush1.bf16.msra.mxu1 %v861_v6  ;;  %v865_v9 = vld [vmem:[#allocation7 + $0x54] ss:$8 sps:$4 sm:$0xff]   ;;  %v867_v10 = vld [vmem:[#allocation7 + $0x50] ss:$8 sps:$4 sm:$0xff]   ;;  %v868_v11 = vld [vmem:[#allocation7 + $0x44] ss:$8 sps:$4 sm:$0xff]  }
  0x43   :  { %381 = vmatprep.subr.bf16.mxu1 %v862_v7  ;;  %v870_v12 = vld [vmem:[#allocation7 + $0x40] ss:$8 sps:$4 sm:$0xff]   ;;  %v871_v13 = vld [vmem:[#allocation7 + $0x34] ss:$8 sps:$4 sm:$0xff]   ;;  %v873_v14 = vld [vmem:[#allocation7 + $0x30] ss:$8 sps:$4 sm:$0xff]  }
  0x44   :  { %733 = vmatmul.mubr.msk.bf16.vlgmr.msra.gmra.mxu0 %vm126_vm0, %v101_v4  ;;  %v874_v15 = vld [vmem:[#allocation7 + $0x24] ss:$8 sps:$4 sm:$0xff]   ;;  %v876_v16 = vld [vmem:[#allocation7 + $0x20] ss:$8 sps:$4 sm:$0xff]   ;;  %v877_v17 = vld [vmem:[#allocation7 + $0x14] ss:$8 sps:$4 sm:$0xff]  }
  0x45   :  { %v879_v18 = vld [vmem:[#allocation7 + $0x10] ss:$8 sps:$4 sm:$0xff]   ;;  %v880_v19 = vld [vmem:[#allocation7 + $0x4] ss:$8 sps:$4 sm:$0xff]   ;;  %v882_v20 = vld [vmem:[#allocation7] ss:$8 sps:$4 sm:$0xff]  }
  0x46   :  { %382 = vmatpush1.bf16.msra.mxu1 %v864_v8  ;;  %v883_v21 = vld [vmem:[#allocation7 + $0xf4] ss:$8 sps:$4 sm:$0xff]   ;;  %v885_v22 = vld [vmem:[#allocation7 + $0xf0] ss:$8 sps:$4 sm:$0xff]   ;;  %v886_v23 = vld [vmem:[#allocation7 + $0xe4] ss:$8 sps:$4 sm:$0xff]  }
  0x47   :  { %383 = vmatprep.subr.bf16.mxu1 %v865_v9  ;;  %v888_v24 = vld [vmem:[#allocation7 + $0xe0] ss:$8 sps:$4 sm:$0xff]   ;;  %v889_v25 = vld [vmem:[#allocation7 + $0xd4] ss:$8 sps:$4 sm:$0xff]   ;;  %v891_v26 = vld [vmem:[#allocation7 + $0xd0] ss:$8 sps:$4 sm:$0xff]  }
  0x48   :  { %v892_v27 = vld [vmem:[#allocation7 + $0xc4] ss:$8 sps:$4 sm:$0xff]   ;;  %v894_v28 = vld [vmem:[#allocation7 + $0xc0] ss:$8 sps:$4 sm:$0xff]   ;;  %v895_v29 = vld [vmem:[#allocation7 + $0xb4] ss:$8 sps:$4 sm:$0xff]  }
  0x49   :  { %v897_v30 = vld [vmem:[#allocation7 + $0xb0] ss:$8 sps:$4 sm:$0xff]   ;;  %v898_v31 = vld [vmem:[#allocation7 + $0xa4] ss:$8 sps:$4 sm:$0xff]   ;;  %v900_v32 = vld [vmem:[#allocation7 + $0xa0] ss:$8 sps:$4 sm:$0xff]  }
  0x4a   :  { %384 = vmatpush1.bf16.msra.mxu1 %v867_v10  ;;  %v901_v33 = vld [vmem:[#allocation7 + $0x94] ss:$8 sps:$4 sm:$0xff]   ;;  %v903_v34 = vld [vmem:[#allocation7 + $0x90] ss:$8 sps:$4 sm:$0xff]   ;;  %v904_v35 = vld [vmem:[#allocation7 + $0x84] ss:$8 sps:$4 sm:$0xff]  }
  0x4b   :  { %385 = vmatprep.subr.bf16.mxu1 %v868_v11  ;;  %v906_v36 = vld [vmem:[#allocation7 + $0x80] ss:$8 sps:$4 sm:$0xff]   ;;  %v907_v37 = vld [vmem:[#allocation8 + $0x78] sm:$0xff]   ;;  %v909_v39 = vld [vmem:[#allocation8 + $0x70] sm:$0xff]   ;;  %v107_v50 = vshrl.u32 %v106_v49, 7  ;;  %v1069_v6 = vmov 0.0  }
  0x4c   :  { %v908_v38 = vld [vmem:[#allocation8 + $0x38] sm:$0xff]   ;;  %792 = vmatprep.subr.bf16.mxu0 %v907_v37  ;;  %v910_v40 = vld [vmem:[#allocation8 + $0x30] sm:$0xff]   ;;  %v911_v41 = vld [vmem:[#allocation8 + $0x68] sm:$0xff]   ;;  %vm1070_vm1 = vmmov 0   ;;  %s1071_s18 = smov [#allocation11]  }
  0x4d   :  { %793 = vmatpush3.bf16.msra.mxu0 %v908_v38  ;;  %v912_v42 = vld [vmem:[#allocation8 + $0x28] sm:$0xff]   ;;  %v913_v43 = vld [vmem:[#allocation8 + $0x60] sm:$0xff]   ;;  %v915_v45 = vld [vmem:[#allocation8 + $0x58] sm:$0xff]   ;;  %v108_v51 = vsub.s32 0, %v107_v50  ;;  %v112_v53 = vsub.s32 1, %v107_v50  ;;  %s720_s19 = sshll.u32 %s1071_s18, 4  ;;  %s721_s19 = int_to_ptr.vmem [resolvable:$true] %s720_s19 }
  0x4e   :  { %386 = vmatpush1.bf16.msra.mxu1 %v870_v12  ;;  %794 = vmatprep.subr.bf16.mxu0 %v909_v39  ;;  %v914_v44 = vld [vmem:[#allocation8 + $0x20] sm:$0xff]   ;;  %v916_v46 = vld [vmem:[#allocation8 + $0x18] sm:$0xff]   ;;  %v917_v47 = vld [vmem:[#allocation8 + $0x50] sm:$0xff]   ;;  %s1035_s20 = scalar_lea.vmem %s721_s19, 32  ;;  %p1036_p12 = scmp.lt.s32.totalorder %s721_s19, %s721_s19 }
  0x4f   :  { %387 = vmatprep.subr.bf16.mxu1 %v871_v13  ;;  %v918_v48 = vld [vmem:[#allocation8 + $0x10] sm:$0xff]   ;;  %v104_v52 = vld [vmem:[%s1166_s2] sm:$0x3]  ;;  %v921_v4 = vld [vmem:[#allocation8 + $0x40] sm:$0xff]  }
  0x50   :  { %v109_v54 = vrot.slane %v104_v52, %v108_v51  ;;  %v113_v55 = vrot.slane %v104_v52, %v112_v53  ;;  %v919_v2 = vld [vmem:[#allocation8 + $0x48] sm:$0xff]   ;;  %v922_v5 = vld [vmem:[#allocation8] sm:$0xff]  }
  0x51   :  { %795 = vmatpush3.bf16.msra.mxu0 %v910_v40  ;;  %v920_v3 = vld [vmem:[#allocation8 + $0x8] sm:$0xff]  }
  0x52   :  { %388 = vmatpush1.bf16.msra.mxu1 %v873_v14  ;;  %796 = vmatprep.subr.bf16.mxu0 %v911_v41  ;;  %v207_v7 = vld [vmem:[%s1168_s4] sm:$0x3] }
  0x53   :  { %389 = vmatprep.subr.bf16.mxu1 %v874_v15  ;;  %v212_v8 = vrot.slane %v207_v7, %v108_v51  ;;  %v216_v9 = vrot.slane %v207_v7, %v112_v53  ;;  %v783_v37 = vld [vmem:[%s1172_s8] ss:$0 sm:$0xff] }
  0x55   :  { %797 = vmatpush3.bf16.msra.mxu0 %v912_v42 }
  0x56   :  { %390 = vmatpush1.bf16.msra.mxu1 %v876_v16  ;;  %798 = vmatprep.subr.bf16.mxu0 %v913_v43 }
  0x57   :  { %391 = vmatprep.subr.bf16.mxu1 %v877_v17 }
  0x59   :  { %799 = vmatpush3.bf16.msra.mxu0 %v914_v44 }
  0x5a   :  { %392 = vmatpush1.bf16.msra.mxu1 %v879_v18  ;;  %800 = vmatprep.subr.bf16.mxu0 %v915_v45 }
  0x5b   :  { %393 = vmatprep.subr.bf16.mxu1 %v880_v19  ;;  %v923_v19 = vld [vmem:[#allocation10 + $0x38] sm:$0xff]  }
  0x5d   :  { %801 = vmatpush3.bf16.msra.mxu0 %v916_v46 }
  0x5e   :  { %394 = vmatpush1.bf16.msra.mxu1 %v882_v20  ;;  %802 = vmatprep.subr.bf16.mxu0 %v917_v47 }
  0x5f   :  { %395 = vmatprep.subr.bf16.mxu1 %v883_v21  ;;  %v924_v21 = vld [vmem:[#allocation10 + $0x30] sm:$0xff]  }
  0x61   :  { %803 = vmatpush3.bf16.msra.mxu0 %v918_v48 }
  0x62   :  { %396 = vmatpush2.bf16.msra.mxu1 %v885_v22  ;;  %804 = vmatprep.subr.bf16.mxu0 %v919_v2  ;;  %v925_v22 = vld [vmem:[#allocation10 + $0x28] sm:$0xff]  }
  0x63   :  { %397 = vmatprep.subr.bf16.mxu1 %v886_v23  ;;  %v926_v23 = vld [vmem:[#allocation10 + $0x20] sm:$0xff]  }
  0x65   :  { %805 = vmatpush3.bf16.msra.mxu0 %v920_v3 }
  0x66   :  { %398 = vmatpush2.bf16.msra.mxu1 %v888_v24  ;;  %806 = vmatprep.subr.bf16.mxu0 %v921_v4  ;;  %v927_v24 = vld [vmem:[#allocation10 + $0x18] sm:$0xff]  }
  0x67   :  { %399 = vmatprep.subr.bf16.mxu1 %v889_v25  ;;  %v928_v25 = vld [vmem:[#allocation10 + $0x10] sm:$0xff]  }
  0x69   :  { %807 = vmatpush3.bf16.msra.mxu0 %v922_v5 }
  0x6a   :  { %400 = vmatpush2.bf16.msra.mxu1 %v891_v26  ;;  %823 = vmatprep.subr.bf16.mxu0 %v1069_v6  ;;  %v929_v26 = vld [vmem:[#allocation10 + $0x8] sm:$0xff]  }
  0x6b   :  { %401 = vmatprep.subr.bf16.mxu1 %v892_v27  ;;  %v930_v27 = vld [vmem:[#allocation10] sm:$0xff]  }
  0x6e   :  { %402 = vmatpush2.bf16.msra.mxu1 %v894_v28 }
  0x6f   :  { %403 = vmatprep.subr.bf16.mxu1 %v895_v29  ;;  %v766_v29 = vld [vmem:[%s1170_s6] ss:$0 sm:$0xff]  ;;  %s1031_s6 = scalar_lea.vmem %s721_s19, 16 }
  0x70   :  { %p1032_p11 = scmp.ne.s32.totalorder %s721_s19, %s1031_s6  ;;  %p1037_p13 = scmp.lt.s32.totalorder %s1035_s20, %s1031_s6 }
  0x72   :  { %404 = vmatpush2.bf16.msra.mxu1 %v897_v30  ;;  %p1038_p0 = por %p1037_p13, %p1036_p12 }
  0x73   :  { %405 = vmatprep.subr.bf16.mxu1 %v898_v31 }
  0x74   :  { %p1039_p1 = pnand %p1038_p0, %p1032_p11 }
  0x76   :  { %406 = vmatpush2.bf16.msra.mxu1 %v900_v32 }
  0x77   :  { %407 = vmatprep.subr.bf16.mxu1 %v901_v33 }
  0x7a   :  { %408 = vmatpush2.bf16.msra.mxu1 %v903_v34 }
  0x7b   :  { %409 = vmatprep.subr.bf16.mxu1 %v904_v35 }
  0x7e   :  { %410 = vmatpush2.bf16.msra.mxu1 %v906_v36 }
 0x104   :  { %v164_v56 = vpop.f32.mrf.mxu0 }
 0x105   :  { %v165_v57 = vadd.f32 %v164_v56, %v109_v54 }
 0x106   :  { %v166_v58 = vpop.f32.mrf.mxu0 }
 0x107   :  { %v167_v59 = vadd.f32 %v166_v58, %v113_v55  ;;  %v171_v60 = vmax.f32 %v165_v57, 0.0 }
 0x108   :  { %v168_v61 = vpop.f32.mrf.mxu0 }
 0x109   :  { %v172_v62 = vmax.f32 %v167_v59, 0.0  ;;  %v173_v1 = vpack.c.bf16 %v171_v60, %v171_v60 }
 0x10a   :  { %v169_v63 = vpop.f32.mrf.mxu0 }
 0x10b   :  { %v174_v0 = vpack.c.bf16 %v172_v62, %v172_v62 }
 0x10d   :  { %411 = vmatprep.mubr.bf16.mxu1 %v174_v0 }
 0x10e   :  { %412 = vmatmul.mubr.bf16.vlgmr.msra.gmra.mxu1 %v173_v1 }
 0x1ce   :  { %v413_v10 = vpop.f32.mrf.mxu1 }
 0x1cf   :  { %v414_v11 = vadd.f32 %v413_v10, %v212_v8 }
 0x1d0   :  { %v415_v12 = vpop.f32.mrf.mxu1 }
 0x1d1   :  { %v416_v13 = vadd.f32 %v415_v12, %v216_v9  ;;  %v420_v14 = vmax.f32 %v414_v11, 0.0 }
 0x1d2   :  { %v417_v15 = vpop.f32.mrf.mxu1 }
 0x1d3   :  { %v421_v16 = vmax.f32 %v416_v13, 0.0  ;;  %v422_v20 = vpack.c.bf16 %v420_v14, %v420_v14 }
 0x1d4   :  { %v418_v17 = vpop.f32.mrf.mxu1 }
 0x1d5   :  { %v423_v18 = vpack.c.bf16 %v421_v16, %v421_v16 }
 0x1d7   :  { %591 = vmatprep.mubr.bf16.mxu0 %v423_v18 }
 0x1d8   :  { %592 = vmatmul.mubr.bf16.vlgmr.msra.gmra.mxu0 %v422_v20 }
 0x1d9   :  { %824 = vmatpush3.bf16.msra.mxu0 %v923_v19  ;;  %839 = vmatprep.mubr.msk.bf16.mxu0 %vm1070_vm1, %v1069_v6 }
 0x1da   :  { %825 = vmatprep.subr.bf16.mxu0 %v1069_v6 }
 0x1dd   :  { %826 = vmatpush3.bf16.msra.mxu0 %v924_v21 }
 0x1de   :  { %827 = vmatprep.subr.bf16.mxu0 %v1069_v6 }
 0x1e1   :  { %828 = vmatpush3.bf16.msra.mxu0 %v925_v22 }
 0x1e2   :  { %829 = vmatprep.subr.bf16.mxu0 %v1069_v6 }
 0x1e5   :  { %830 = vmatpush3.bf16.msra.mxu0 %v926_v23 }
 0x1e6   :  { %831 = vmatprep.subr.bf16.mxu0 %v1069_v6 }
 0x1e9   :  { %832 = vmatpush3.bf16.msra.mxu0 %v927_v24 }
 0x1ea   :  { %833 = vmatprep.subr.bf16.mxu0 %v1069_v6 }
 0x1ed   :  { %834 = vmatpush3.bf16.msra.mxu0 %v928_v25 }
 0x1ee   :  { %835 = vmatprep.subr.bf16.mxu0 %v1069_v6 }
 0x1f1   :  { %836 = vmatpush3.bf16.msra.mxu0 %v929_v26 }
 0x1f2   :  { %837 = vmatprep.subr.bf16.mxu0 %v1069_v6 }
 0x1f5   :  { %838 = vmatpush3.bf16.msra.mxu0 %v930_v27 }
 0x298   :  { %v808_v28 = vpop.f32.mrf.mxu0 }
 0x29a   :  { %v809_v30 = vpop.f32.mrf.mxu0 }
 0x29b   :  { %v810_v31 = vadd.f32 %v809_v30, %v808_v28 }
 0x29c   :  { %v811_v32 = vpop.f32.mrf.mxu0 }
 0x29d   :  { %v594_v33 = vadd.f32 %v810_v31, %v766_v29 }
 0x29e   :  { %v812_v34 = vpop.f32.mrf.mxu0 }
 0x29f   :  { %v599_v35 = vmax.f32 %v594_v33, 0.0 }
 0x2a1   :  { %v600_v36 = vpack.c.bf16 %v599_v35, %v599_v35 }
 0x2a3   :  { %840 = vmatmul.mubr.bf16.vlgmr.msra.gmra.mxu0 %v600_v36 }
 0x363   :  { %v706_v38 = vpop.f32.mrf.mxu0 }
 0x364   :  { %v707_v39 = vadd.f32 %v783_v37, %v706_v38 }
 0x365   :  { %v841_v40 = vpop.f32.mrf.mxu0 }
 0x366   :  { %v712_v41 = vpack.c.bf16 %v707_v39, %v707_v39 }
 0x367   :  { %v709_v42 = vpop.f32.mrf.mxu0 }
 0x368   :  { %713 = vst [vmem:[#allocation11] sm:$0x1] %v712_v41 }
 0x369   :  { %v842_v43 = vpop.f32.mrf.mxu0 }
 0x36a   :  { %1042 = shalt.err (!%p1039_p1)
}
 0x36b   :  { %723 = dma.vmem_to_hbm [thread:$0]  %s721_s19, 16, %s1173_s9, [#allocation4]  }
 0x36c   :  { %1057 = dma.done.wait [#allocation4], 16  }
 0x36d   :  { %1058 = vsyncadd [#allocation4], 4294967280 }
 0x36e   :  { %727 = vsyncpa [#allocation3], 1 }
 0x36f   :  { %728 = vsyncpa [#allocation6], 1 }
 0x370   :  { %729 = vsyncpa [#allocation9], 1 }
 0x371   :  { %730 = vsyncpa [#allocation4], 1 }

</bundles_post_ra>
